<compile_context>
chip_gen: v7x
topology: tpu7x:2x2x1
jax: 0.10.0
libtpu: 0.0.40
codegen_flags: <defaults>
</compile_context>

<pallas_src>
import functools

import jax
import jax.numpy as jnp
from jax.experimental import pallas as pl
from jax.experimental.pallas import tpu as pltpu

# --- config (mirrors `config.dim_model`, `config.compression_rate`) -------
DIM_MODEL = 32
COMPRESSION_RATE = 4

_LANE = 128                # TPU lane width
_TILE_ROWS_TARGET = 16384  # output tokens per grid step (~20 MiB/step double-buffered)
_MIN_KERNEL_ROWS = 512     # below this, XLA dot beats pallas_call fixed cost
_SPLIT_ROWS = 2048         # above this, force >=2 grid steps (v7x megacore)


def _round_up(a, b):
    return (a + b - 1) // b * b


def _compression_kernel(x_ref, w_ref, b_ref, o_ref):
    # x_ref: (tile_mp, Kp) input dtype    w_ref: (Kp, Np) bf16
    # b_ref: (1, Np) f32                  o_ref: (tile_mp, Np) out dtype
    # Cast to bf16 on the VPU right before the MXU op (hidden under input DMA).
    x = x_ref[...].astype(jnp.bfloat16)
    acc = jnp.dot(x, w_ref[...], preferred_element_type=jnp.float32)
    o_ref[...] = (acc + b_ref[...]).astype(o_ref.dtype)


def prepare_compression_params(weight, bias):
    """One-time parameter transform: call at init, NOT per forward.

    weight: (D_out, D_in, rate) Conv1d weight;  bias: (D_out,)
    Returns (w_packed bf16 of shape (pack*rate*D_in, pack*D_out),
             b_packed f32  of shape (1, pack*D_out),
             pack).
    """
    D_out, D_in, rate = weight.shape
    K = rate * D_in
    # w_mat[k*D_in + d_in, d_out] = weight[d_out, d_in, k]
    w_mat = jnp.transpose(weight, (2, 1, 0)).reshape(K, D_out)

    # Lane-dense packing factor: pack `pack` consecutive output tokens into
    # one 128-lane output row.  (Kept at 128//D; do NOT widen on v5e.)
    if D_out < _LANE and _LANE % D_out == 0:
        pack = _LANE // D_out
    else:
        pack = 1

    if pack > 1:
        # Block-diagonal expansion so `pack` tokens come out of one matmul row.
        w_mat = jnp.kron(jnp.eye(pack, dtype=w_mat.dtype), w_mat)
        b_row = jnp.tile(bias, pack).reshape(1, pack * D_out)
    else:
        b_row = bias.reshape(1, D_out)

    return w_mat.astype(jnp.bfloat16), b_row.astype(jnp.float32), pack


@functools.partial(
    jax.jit,
    static_argnames=("rate", "pack", "out_dtype", "tile_rows_target",
                     "min_kernel_rows", "force_kernel"))
def compression_forward(x, w_packed, b_packed, *, rate, pack, out_dtype=None,
                        tile_rows_target=_TILE_ROWS_TARGET,
                        min_kernel_rows=_MIN_KERNEL_ROWS,
                        force_kernel=False):
    """x: (B, L, D_in).  Returns (B, L // rate, D_out) in out_dtype (default x.dtype)."""
    B, L, D_in = x.shape
    assert L % rate == 0, "sequence length must be divisible by compression_rate"
    L_out = L // rate
    M = B * L_out
    out_dtype = x.dtype if out_dtype is None else out_dtype

    Kp, Np = w_packed.shape
    K = Kp // pack            # = rate * D_in
    N = Np // pack            # = D_out
    assert K == rate * D_in

    # Fold non-overlapping conv windows into the contraction dim.
    # Contiguous reshape: no data movement, and NO standalone dtype cast here.
    x_flat = x.reshape(M, K)

    # --- tiny-M dispatch: pallas_call fixed cost dominates -> let XLA do it.
    # TODO(synk): in a real model, fuse this matmul as an epilogue of the
    # adjacent Pallas kernel instead of either path here.
    if M < min_kernel_rows and not force_kernel:
        w_mat = w_packed[:K, :N]          # top-left block == original weight (bf16)
        out = jnp.dot(x_flat.astype(jnp.bfloat16), w_mat,
                      preferred_element_type=jnp.float32) + b_packed[0, :N]
        return out.astype(out_dtype).reshape(B, L_out, N)

    # --- pack `pack` consecutive tokens per 128-lane output row --------------
    # Pad only when M isn't a multiple of pack (<= pack-1 rows; rare & tiny).
    M_round = _round_up(M, pack)
    if M_round != M:
        x_flat = jnp.pad(x_flat, ((0, M_round - M), (0, 0)))
    mp = M_round // pack
    x_packed = x_flat.reshape(mp, Kp)     # contiguous, free

    # --- balanced tiling; no row padding, partial last block is masked -------
    target_mp = max(tile_rows_target // pack, 8)
    num_tiles = pl.cdiv(mp, target_mp)
    if mp * pack >= _SPLIT_ROWS:
        num_tiles = max(num_tiles, 2)     # keep both v7x TensorCores busy
    if num_tiles == 1:
        tile_mp = mp                      # block == full array (any shape allowed)
    else:
        tile_mp = _round_up(pl.cdiv(mp, num_tiles), 8)
    grid_m = pl.cdiv(mp, tile_mp)

    x_bytes = jnp.dtype(x.dtype).itemsize
    o_bytes = jnp.dtype(out_dtype).itemsize
    cost = pl.CostEstimate(
        flops=2 * mp * Kp * Np,
        transcendentals=0,
        bytes_accessed=mp * Kp * x_bytes + Kp * Np * 2 + Np * 4 + mp * Np * o_bytes,
    )

    out_packed = pl.pallas_call(
        _compression_kernel,
        out_shape=jax.ShapeDtypeStruct((mp, Np), out_dtype),
        grid_spec=pltpu.PrefetchScalarGridSpec(
            num_scalar_prefetch=0,
            grid=(grid_m,),
            in_specs=[
                pl.BlockSpec((tile_mp, Kp), lambda i: (i, 0)),   # streamed x tile
                pl.BlockSpec((Kp, Np), lambda i: (0, 0)),        # resident weight
                pl.BlockSpec((1, Np), lambda i: (0, 0)),         # resident bias
            ],
            out_specs=pl.BlockSpec((tile_mp, Np), lambda i: (i, 0)),
        ),
        compiler_params=pltpu.CompilerParams(
            # no reduction axis carried in the output -> safe to megacore-shard
            dimension_semantics=("parallel",),
            vmem_limit_bytes=48 * 1024 * 1024,
        ),
        cost_estimate=cost,
    )(x_packed, w_packed, b_packed)

    # Packed (mp, pack*N) is bit-identical to row-major (M_round, N): reshape only.
    out_flat = out_packed.reshape(M_round, N)
    if M_round != M:
        out_flat = out_flat[:M]
    return out_flat.reshape(B, L_out, N)


def reference_forward(x, weight, bias, rate, *, cast_bf16=False):
    """Pure-JAX reference: Conv1d(kernel=stride=rate) over the sequence axis."""
    B, L, D = x.shape
    L_out = L // rate
    if cast_bf16:
        x = x.astype(jnp.bfloat16).astype(jnp.float32)
        weight = weight.astype(jnp.bfloat16).astype(jnp.float32)
    xw = x.reshape(B, L_out, rate, D)
    out = jnp.einsum("btkc,ock->bto", xw, weight,
                     precision=jax.lax.Precision.HIGHEST) + bias[None, None, :]
    return out


if __name__ == "__main__":
    key = jax.random.PRNGKey(0)
    k_x, k_w, k_b = jax.random.split(key, 3)

    D, r = DIM_MODEL, COMPRESSION_RATE

    # Deterministic parameter init (PyTorch Conv1d-style uniform bound).
    fan_in = D * r
    bound = 1.0 / (fan_in ** 0.5)
    weight = jax.random.uniform(k_w, (D, D, r), jnp.float32, -bound, bound)
    bias = jax.random.uniform(k_b, (D,), jnp.float32, -bound, bound)

    # One-time parameter packing (outside the hot path).
    w_packed, b_packed, pack = prepare_compression_params(weight, bias)

    # Test cases: (B, L, force_kernel)
    cases = [
        (2, 16, True),     # module-default tiny shape, forced through the Pallas kernel
        (2, 16, False),    # same shape via the tiny-M XLA dispatch path
        (4, 2048, True),   # M=2048 -> grid of 2 (megacore split), even tiles
        (3, 1004, True),   # M=753: not a multiple of pack -> minimal pad/slice path
        (3, 4000, True),   # M=3000 -> partial last block (masked OOB rows)
    ]
    for idx, (B, L, force) in enumerate(cases):
        kx = jax.random.fold_in(k_x, idx)
        x = jax.random.normal(kx, (B, L, D), jnp.float32)

        out = compression_forward(x, w_packed, b_packed, rate=r, pack=pack,
                                  force_kernel=force)
        out = jax.block_until_ready(out)
        assert out.shape == (B, L // r, D), out.shape
        assert out.dtype == x.dtype

        # Tight check vs. a reference that uses the same bf16-rounded operands.
        ref_bf16 = reference_forward(x, weight, bias, r, cast_bf16=True)
        assert jnp.allclose(out, ref_bf16, atol=1e-4, rtol=1e-4), \
            f"case {idx}: mismatch vs bf16-operand reference"

        # Loose sanity check vs. the full-f32 Conv1d math (bf16 operand rounding).
        ref_f32 = reference_forward(x, weight, bias, r, cast_bf16=False)
        assert jnp.allclose(out, ref_f32, atol=3e-2, rtol=3e-2), \
            f"case {idx}: mismatch vs f32 reference"

    print("KERNEL_OK")
</pallas_src>

<mosaic_0001>
module attributes {stable_mosaic.version = 11 : i64} {
  func.func @_compression_kernel(%arg0: i32, %arg1: memref<2x512xf32, #tpu.memory_space<vmem>>, %arg2: memref<512x128xbf16, #tpu.memory_space<vmem>>, %arg3: memref<1x128xf32, #tpu.memory_space<vmem>>, %arg4: memref<2x128xf32, #tpu.memory_space<vmem>>) attributes {dimension_semantics = [#tpu.dimension_semantics<parallel>], iteration_bounds = array<i64: 1>, scalar_prefetch = 0 : i64, scratch_operands = 0 : i64, tpu.core_type = #tpu.core_type<tc>, window_params = [{transform_indices = @transform_0, window_bounds = array<i64: 2, 512>}, {pipeline_mode = #tpu.pipeline_mode<synchronous>, transform_indices = @transform_1, window_bounds = array<i64: 512, 128>}, {pipeline_mode = #tpu.pipeline_mode<synchronous>, transform_indices = @transform_2, window_bounds = array<i64: 1, 128>}, {transform_indices = @transform_3, window_bounds = array<i64: 2, 128>}]} {
    %c0 = arith.constant 0 : index
    %c0_0 = arith.constant 0 : index
    %0 = vector.load %arg1[%c0, %c0_0] : memref<2x512xf32, #tpu.memory_space<vmem>>, vector<2x512xf32>
    %1 = arith.truncf %0 : vector<2x512xf32> to vector<2x512xbf16>
    %c0_1 = arith.constant 0 : index
    %c0_2 = arith.constant 0 : index
    %2 = vector.load %arg2[%c0_1, %c0_2] : memref<512x128xbf16, #tpu.memory_space<vmem>>, vector<512x128xbf16>
    %cst = arith.constant dense<0.000000e+00> : vector<2x128xf32>
    %3 = tpu.matmul %1, %2, %cst {dimension_numbers = #tpu.dot_dimension_numbers<[1], [0], [0], [1], [0, 0, 1, 1], [], []>} : vector<2x512xbf16>, vector<512x128xbf16>, vector<2x128xf32> -> vector<2x128xf32>
    %c0_3 = arith.constant 0 : index
    %c0_4 = arith.constant 0 : index
    %4 = vector.load %arg3[%c0_3, %c0_4] : memref<1x128xf32, #tpu.memory_space<vmem>>, vector<1x128xf32>
    %5 = vector.broadcast %4 : vector<1x128xf32> to vector<2x128xf32>
    %6 = arith.addf %3, %5 : vector<2x128xf32>
    %c0_5 = arith.constant 0 : index
    %c0_6 = arith.constant 0 : index
    %7 = vector.load %arg4[%c0_5, %c0_6] : memref<2x128xf32, #tpu.memory_space<vmem>>, vector<2x128xf32>
    tpu.vector_store %arg4[%c0_5, %c0_6], %6 {strides = array<i32>} : memref<2x128xf32, #tpu.memory_space<vmem>>, vector<2x128xf32>,
    return
  }
  func.func @transform_0(%arg0: i32) -> (i32, i32) {
    %c0_i32 = arith.constant 0 : i32
    %c0_i32_0 = arith.constant 0 : i32
    return %arg0, %c0_i32 : i32, i32
  }
  func.func @transform_1(%arg0: i32) -> (i32, i32) {
    %c0_i32 = arith.constant 0 : i32
    %c0_i32_0 = arith.constant 0 : i32
    %c0_i32_1 = arith.constant 0 : i32
    return %c0_i32, %c0_i32_0 : i32, i32
  }
  func.func @transform_2(%arg0: i32) -> (i32, i32) {
    %c0_i32 = arith.constant 0 : i32
    %c0_i32_0 = arith.constant 0 : i32
    %c0_i32_1 = arith.constant 0 : i32
    return %c0_i32, %c0_i32_0 : i32, i32
  }
  func.func @transform_3(%arg0: i32) -> (i32, i32) {
    %c0_i32 = arith.constant 0 : i32
    %c0_i32_0 = arith.constant 0 : i32
    return %arg0, %c0_i32 : i32, i32
  }
}

</mosaic_0001>

<bundles_post_ra>
// kernel: compression_forward.1
= control target key start
LH: loop header
LB: loop body
LE: loop exit
PB: predicated region body
PF: predicated region fallthrough
CT: control target
= control target key end

     0   :  { %8 = vsyncpa [#allocation3], 0  ;;  %s543_s12 = smov [#allocation2]   ;;  %s588_s0 = inlined_call_operand.vmem [shape: f32[2,512], index: 0, kind: input, shape index: {}]   ;;  %s589_s1 = inlined_call_operand.hbm [shape: bf16[512,128], index: 1, kind: input, shape index: {}]   ;;  %s590_s2 = inlined_call_operand.vmem [shape: f32[1,128], index: 2, kind: input, shape index: {}]   ;;  %s591_s3 = inlined_call_operand.vmem [shape: f32[2,128], index: 3, kind: output, shape index: {}]  }
   0x1   :  { %s16_s13 = sshll.u32 %s543_s12, 4  ;;  %s519_s16 = scalar_lea.hbm %s589_s1, 4096  ;;  %s17_s13 = int_to_ptr.vmem [resolvable:$true] %s16_s13 }
   0x2   :  { %p520_p0 = scmp.ne.s32.totalorder %s589_s1, %s519_s16  ;;  %p523_p1 = scmp.lt.u32.totalorder %s519_s16, %s589_s1 }
   0x4   :  { %p525_p2 = pnand %p523_p1, %p520_p0 }
   0x6   :  { %528 = shalt.err (!%p525_p2)
}
   0x7   :  { %s529_s21 = scalar_lea.vmem %s17_s13, 4096  ;;  %p534_p4 = scmp.lt.s32.totalorder %s17_s13, %s17_s13 }
   0x8   :  { %p530_p3 = scmp.ne.s32.totalorder %s17_s13, %s529_s21  ;;  %p535_p5 = scmp.lt.s32.totalorder %s529_s21, %s529_s21 }
   0xa   :  { %p536_p6 = por %p535_p5, %p534_p4 }
   0xc   :  { %p537_p7 = pnand %p536_p6, %p530_p3 }
   0xe   :  { %540 = shalt.err (!%p537_p7)
}
   0xf   :  { %s544_s22 = smov 64   ;;  %s545_s23 = smov 4  }
  0x10   :  { %22 = dma.hbm_to_vmem [thread:$0]  %s589_s1, 4096, %s17_s13, [#allocation3], %s544_s22, %s544_s22, %s545_s23  }
  0x11   :  { %541 = dma.done.wait [#allocation3], 4096  }
  0x12   :  { %542 = vsyncadd [#allocation3], 4294963200  ;;  %v486_v0 = vld [vmem:[#allocation2 + $0x40] sm:$0xff]   ;;  %v490_v4 = vld [vmem:[#allocation2 + $0x48] sm:$0xff]   ;;  %v546_v22 = vmov 1983009808   ;;  %v35_v24 = vlaneseq }
  0x13   :  { %v487_v1 = vld [vmem:[#allocation2 + $0xc0] sm:$0xff]   ;;  %438 = vmatprep.subr.bf16.mxu0 %v486_v0  ;;  %v491_v5 = vld [vmem:[#allocation2 + $0xc8] sm:$0xff]   ;;  %v494_v8 = vld [vmem:[#allocation2 + $0x50] sm:$0xff]   ;;  %v33_v23 = vunpack.c.l.s4 %v546_v22 }
  0x14   :  { %v488_v2 = vld [vmem:[#allocation2] sm:$0xff]   ;;  %460 = vmatprep.subr.bf16.mxu1 %v487_v1  ;;  %v492_v6 = vld [vmem:[#allocation2 + $0x8] sm:$0xff]   ;;  %v495_v9 = vld [vmem:[#allocation2 + $0xd0] sm:$0xff]   ;;  %v36_v30 = vshrl.u32 %v35_v24, 7 }
  0x15   :  { %v489_v3 = vld [vmem:[#allocation2 + $0x80] sm:$0xff]   ;;  %439 = vmatpush3.bf16.msra.mxu0 %v488_v2  ;;  %v493_v7 = vld [vmem:[#allocation2 + $0x88] sm:$0xff]   ;;  %v496_v10 = vld [vmem:[#allocation2 + $0x10] sm:$0xff]   ;;  %v34_v29 = vunpack.c.0.s8 %v33_v23 }
  0x16   :  { %461 = vmatpush3.bf16.msra.mxu1 %v489_v3  ;;  %440 = vmatprep.subr.bf16.mxu0 %v490_v4  ;;  %v497_v11 = vld [vmem:[#allocation2 + $0x90] sm:$0xff]   ;;  %v498_v12 = vld [vmem:[#allocation2 + $0x58] sm:$0xff]   ;;  %v502_v16 = vld [vmem:[#allocation2 + $0x60] sm:$0xff]  }
  0x17   :  { %462 = vmatprep.subr.bf16.mxu1 %v491_v5  ;;  %v499_v13 = vld [vmem:[#allocation2 + $0xd8] sm:$0xff]   ;;  %v503_v17 = vld [vmem:[#allocation2 + $0xe0] sm:$0xff]   ;;  %v506_v20 = vld [vmem:[#allocation2 + $0x68] sm:$0xff]   ;;  %v37_v35 = vsub.s32 %v34_v29, %v36_v30 }
  0x18   :  { %v500_v14 = vld [vmem:[#allocation2 + $0x18] sm:$0xff]   ;;  %v504_v18 = vld [vmem:[#allocation2 + $0x20] sm:$0xff]   ;;  %v507_v21 = vld [vmem:[#allocation2 + $0xe8] sm:$0xff]  }
  0x19   :  { %441 = vmatpush3.bf16.msra.mxu0 %v492_v6  ;;  %v501_v15 = vld [vmem:[#allocation2 + $0x98] sm:$0xff]   ;;  %v505_v19 = vld [vmem:[#allocation2 + $0xa0] sm:$0xff]   ;;  %v508_v25 = vld [vmem:[#allocation2 + $0x28] sm:$0xff]  }
  0x1a   :  { %463 = vmatpush3.bf16.msra.mxu1 %v493_v7  ;;  %442 = vmatprep.subr.bf16.mxu0 %v494_v8  ;;  %v509_v26 = vld [vmem:[#allocation2 + $0xa8] sm:$0xff]   ;;  %v510_v27 = vld [vmem:[#allocation2 + $0x70] sm:$0xff]   ;;  %v514_v33 = vld [vmem:[#allocation2 + $0x78] sm:$0xff]  }
  0x1b   :  { %464 = vmatprep.subr.bf16.mxu1 %v495_v9  ;;  %v511_v28 = vld [vmem:[#allocation2 + $0xf0] sm:$0xff]   ;;  %v515_v34 = vld [vmem:[#allocation2 + $0xf8] sm:$0xff]   ;;  %v29_v38 = vld [vmem:[%s588_s0] sm:$0xff] }
  0x1c   :  { %v512_v31 = vld [vmem:[#allocation2 + $0x30] sm:$0xff]   ;;  %v516_v36 = vld [vmem:[#allocation2 + $0x38] sm:$0xff]   ;;  %v38_v39 = vrot.slane %v29_v38, %v37_v35  ;;  %v31_v40 = vcombine.high %v29_v38, %v29_v38  ;;  %v405_v49 = vld [vmem:[%s590_s2] ss:$0 sm:$0xff] }
  0x1d   :  { %443 = vmatpush3.bf16.msra.mxu0 %v496_v10  ;;  %v513_v32 = vld [vmem:[#allocation2 + $0xb0] sm:$0xff]   ;;  %v517_v37 = vld [vmem:[#allocation2 + $0xb8] sm:$0xff]  }
  0x1e   :  { %465 = vmatpush3.bf16.msra.mxu1 %v497_v11  ;;  %444 = vmatprep.subr.bf16.mxu0 %v498_v12  ;;  %v46_v41 = vcombine.high %v38_v39, %v38_v39  ;;  %v45_v42 = vrot.slane %v31_v40, %v37_v35  ;;  %v52_v43 = vpack.c.bf16 %v38_v39, %v38_v39 }
  0x1f   :  { %466 = vmatprep.subr.bf16.mxu1 %v499_v13 }
  0x20   :  { %v53_v44 = vpack.c.bf16 %v46_v41, %v46_v41  ;;  %v47_v45 = vcombine.high %v45_v42, %v45_v42  ;;  %v54_v46 = vpack.c.bf16 %v45_v42, %v45_v42 }
  0x21   :  { %445 = vmatpush3.bf16.msra.mxu0 %v500_v14 }
  0x22   :  { %467 = vmatpush3.bf16.msra.mxu1 %v501_v15  ;;  %446 = vmatprep.subr.bf16.mxu0 %v502_v16  ;;  %v55_v47 = vpack.c.bf16 %v47_v45, %v47_v45 }
  0x23   :  { %468 = vmatprep.subr.bf16.mxu1 %v503_v17  ;;  %351 = vmatprep.mubr.bf16.mxu0 %v53_v44 }
  0x24   :  { %391 = vmatprep.mubr.bf16.mxu1 %v55_v47 }
  0x25   :  { %447 = vmatpush3.bf16.msra.mxu0 %v504_v18 }
  0x26   :  { %469 = vmatpush3.bf16.msra.mxu1 %v505_v19  ;;  %448 = vmatprep.subr.bf16.mxu0 %v506_v20 }
  0x27   :  { %470 = vmatprep.subr.bf16.mxu1 %v507_v21 }
  0x29   :  { %449 = vmatpush3.bf16.msra.mxu0 %v508_v25 }
  0x2a   :  { %471 = vmatpush3.bf16.msra.mxu1 %v509_v26  ;;  %450 = vmatprep.subr.bf16.mxu0 %v510_v27 }
  0x2b   :  { %472 = vmatprep.subr.bf16.mxu1 %v511_v28 }
  0x2d   :  { %451 = vmatpush3.bf16.msra.mxu0 %v512_v31 }
  0x2e   :  { %473 = vmatpush3.bf16.msra.mxu1 %v513_v32  ;;  %452 = vmatprep.subr.bf16.mxu0 %v514_v33 }
  0x2f   :  { %474 = vmatprep.subr.bf16.mxu1 %v515_v34 }
  0x31   :  { %453 = vmatpush3.bf16.msra.mxu0 %v516_v36 }
  0x32   :  { %475 = vmatpush3.bf16.msra.mxu1 %v517_v37 }
  0x34   :  { %352 = vmatmul.mubr.bf16.vlgmr.msra.gmra.mrb[0].mxu0 %v52_v43 }
  0x35   :  { %392 = vmatmul.mubr.bf16.vlgmr.msra.gmra.mrb[0].mxu1 %v54_v46 }
 0x107   :  { %v454_v48 = vpop.f32.mrb[0].mxu0 }
 0x108   :  { %v455_v50 = vpop.f32.mrb[1].mxu0  ;;  %v476_v51 = vpop.f32.mrb[0].mxu1 }
 0x109   :  { %v456_v52 = vadd.f32 %v455_v50, %v454_v48  ;;  %v457_v53 = vpop.f32.mrb[2].mxu0  ;;  %v477_v54 = vpop.f32.mrb[1].mxu1 }
 0x10a   :  { %v458_v55 = vpop.f32.mrb[3].mxu0  ;;  %v478_v57 = vadd.f32 %v477_v54, %v476_v51  ;;  %v479_v58 = vpop.f32.mrb[2].mxu1 }
 0x10b   :  { %v354_v56 = vadd.f32 %v456_v52, %v405_v49  ;;  %v480_v59 = vpop.f32.mrb[3].mxu1 }
 0x10d   :  { %v394_v60 = vadd.f32 %v478_v57, %v354_v56 }
 0x10f   :  { %399 = vst [vmem:[%s591_s3] sm:$0x3] %v394_v60 }
 0x110   :  { %404 = vsyncpa [#allocation3], 1 }

</bundles_post_ra>
